<compile_context>
chip_gen: v7x
topology: tpu7x:2x2x1
jax: 0.10.0
libtpu: 0.0.40
codegen_flags: <defaults>
</compile_context>

<pallas_src>
import functools

import jax
import jax.numpy as jnp
import numpy as np
from jax.experimental import pallas as pl
from jax.experimental.pallas import tpu as pltpu

# Synthetic stand-in for managan's letter_code / structures tables
# (RES_LEN[letter] = get_residue_len(letter) = number of atoms in that residue).
LETTER_CODE = {"A": 0, "G": 1, "V": 2, "L": 3}
RES_LEN = {"A": 5, "G": 4, "V": 7, "L": 8}
NATOM_MAX = max(RES_LEN.values())

INDS = 1          # trailing tensor-index dims = (3,)^INDS
AMINO_DIM = 32    # amino_dim
ATOM_DIM = 4      # atom_dim
BATCH = 2
SEQ = "AGVLAGLA"  # 8 residues, 46 atoms total


def _round_up(n, m):
    return -(-n // m) * m


# --------------------------------------------------------------------------
# Kernel: one residue per grid step.
#   letter_ids_ref : SMEM int32 (R,)   -- consumed by the weight index_map only
#   x_ref          : (1, M_pad, K_pad) bf16  rows = batch*3^inds (zero padded)
#   w_ref          : (1, K_pad, N_pad) bf16  this residue's per-letter weight slab
#   o_ref          : (1, M_pad, N_pad) f32   lane-dense output slab
# --------------------------------------------------------------------------
def lin_amino_to_atom_kernel(letter_ids_ref, x_ref, w_ref, o_ref):
    del letter_ids_ref  # only used by the index_maps
    o_ref[0] = jnp.dot(x_ref[0], w_ref[0], preferred_element_type=jnp.float32)


# --------------------------------------------------------------------------
# One-time (params-only) weight-table build -- hoisted out of the forward path.
# Table layout: table[letter, k, o] = W_letter[o, k] (i.e. W^T), zero padded to
# (K_pad, N_pad) with K_pad = round_up(amino_dim, 128),
# N_pad = round_up(NATOM_MAX * atom_dim, 128).
# --------------------------------------------------------------------------
def build_weight_table(params, amino_dim, atom_dim, dtype=jnp.bfloat16):
    n_letters = len(LETTER_CODE)
    K_pad = _round_up(amino_dim, 128)
    N_pad = _round_up(NATOM_MAX * atom_dim, 128)
    table = np.zeros((n_letters, K_pad, N_pad), dtype=np.float32)
    for letter, idx in LETTER_CODE.items():
        W = np.asarray(params[letter])                      # (n*atom_dim, amino_dim)
        n_out = RES_LEN[letter] * atom_dim
        table[idx, :amino_dim, :n_out] = W.T
    return jnp.asarray(table, dtype=dtype)


def build_seq_metadata(seq):
    """Per-sequence constants (built once per sequence, not per forward)."""
    letter_ids = jnp.asarray([LETTER_CODE[l] for l in seq], dtype=jnp.int32)
    res_lens = tuple(RES_LEN[l] for l in seq)
    return letter_ids, res_lens


# --------------------------------------------------------------------------
# Forward
# --------------------------------------------------------------------------
@functools.partial(jax.jit, static_argnames=("res_lens", "atom_dim"))
def lin_amino_to_atom(x, letter_ids, w_table, *, res_lens, atom_dim):
    """x: (batch, R, amino_dim, (3,)^inds) -> (batch, total_atoms, atom_dim, (3,)^inds)"""
    batch, R, amino_dim = x.shape[:3]
    ind_dims = x.shape[3:]
    t = 1
    for d in ind_dims:
        t *= d
    bt = batch * t

    M_pad = _round_up(bt, 8)                 # sublane multiple
    _, K_pad, N_pad = w_table.shape          # both 128-multiples (lane dense)

    # (batch, R, amino, t) -> (R, bt, amino): rows = (batch, tensor-index),
    # cols = amino channels of this residue.
    xr = x.reshape(batch, R, amino_dim, t)
    xr = jnp.transpose(xr, (1, 0, 3, 2)).reshape(R, bt, amino_dim)
    # Single zero-fill pad; bf16 operands for the MXU.
    x_pad = jnp.pad(xr, ((0, 0), (0, M_pad - bt), (0, K_pad - amino_dim)))
    x_pad = x_pad.astype(w_table.dtype)

    out_pad = pl.pallas_call(
        lin_amino_to_atom_kernel,
        out_shape=jax.ShapeDtypeStruct((R, M_pad, N_pad), jnp.float32),
        grid_spec=pltpu.PrefetchScalarGridSpec(
            num_scalar_prefetch=1,
            grid=(R,),
            in_specs=[
                # x: residue i's rows
                pl.BlockSpec((1, M_pad, K_pad), lambda i, lids: (i, 0, 0)),
                # weights: indexed by this residue's letter id (scalar prefetch)
                pl.BlockSpec((1, K_pad, N_pad), lambda i, lids: (lids[i], 0, 0)),
            ],
            out_specs=pl.BlockSpec((1, M_pad, N_pad), lambda i, lids: (i, 0, 0)),
        ),
        compiler_params=pltpu.CompilerParams(
            # residues are independent -> shard the grid across both v7x TCs
            dimension_semantics=("parallel",),
            vmem_limit_bytes=32 * 1024 * 1024,
        ),
    )(letter_ids, x_pad, w_table)

    # Compact the NATOM_MAX-padded per-residue slabs back to the PyTorch layout:
    # (batch, total_atoms, atom_dim, (3,)^inds).
    pieces = []
    for i, n_i in enumerate(res_lens):
        y = out_pad[i, :bt, :n_i * atom_dim].reshape(batch, t, n_i, atom_dim)
        pieces.append(jnp.moveaxis(y, 1, 3))              # (batch, n_i, atom_dim, t)
    out = jnp.concatenate(pieces, axis=1)                 # (batch, atoms, atom_dim, t)
    return out.reshape(out.shape[:3] + ind_dims)


# --------------------------------------------------------------------------
# References
# --------------------------------------------------------------------------
def reference_forward(x, seq, params, atom_dim, cast_bf16=False):
    """Plain-JAX reference of the PyTorch forward."""
    batch = x.shape[0]
    amino_dim = x.shape[2]
    ind_dims = x.shape[3:]
    outs = []
    for i, letter in enumerate(seq):
        W = params[letter]                                 # (n*atom_dim, amino_dim)
        xi = x[:, i].reshape(batch, amino_dim, -1)         # (b, amino_dim, t)
        if cast_bf16:
            W = W.astype(jnp.bfloat16).astype(jnp.float32)
            xi = xi.astype(jnp.bfloat16).astype(jnp.float32)
        y = jnp.einsum("om,bmt->bot", W, xi,
                       precision=jax.lax.Precision.HIGHEST)
        outs.append(y.reshape(batch, RES_LEN[letter], atom_dim, *ind_dims))
    return jnp.concatenate(outs, axis=1)


def init_params(key, amino_dim, atom_dim):
    """Deterministic synthetic per-letter TensLinear weights (no bias: inds>0)."""
    params = {}
    for letter in sorted(LETTER_CODE):
        n = RES_LEN[letter]
        key, k = jax.random.split(key)
        params[letter] = (jax.random.normal(k, (n * atom_dim, amino_dim), jnp.float32)
                          / jnp.sqrt(amino_dim))
    return params


if __name__ == "__main__":
    seq = SEQ
    key = jax.random.PRNGKey(0)
    kx, kp = jax.random.split(key)

    params = init_params(kp, AMINO_DIM, ATOM_DIM)
    x = jax.random.normal(kx, (BATCH, len(seq), AMINO_DIM) + (3,) * INDS, jnp.float32)

    # Hoisted one-time preparation (params-only / seq-only).
    w_table = build_weight_table(params, AMINO_DIM, ATOM_DIM, dtype=jnp.bfloat16)
    letter_ids, res_lens = build_seq_metadata(seq)

    out = lin_amino_to_atom(x, letter_ids, w_table,
                            res_lens=res_lens, atom_dim=ATOM_DIM)
    jax.block_until_ready(out)

    total_atoms = sum(RES_LEN[l] for l in seq)             # 46
    assert out.shape == (BATCH, total_atoms, ATOM_DIM) + (3,) * INDS

    # bf16-rounded-operand reference (same math as kernel: bf16 inputs, f32 acc)
    ref_bf16 = reference_forward(x, seq, params, ATOM_DIM, cast_bf16=True)
    assert jnp.allclose(out, ref_bf16, atol=1e-3, rtol=1e-3), \
        float(jnp.max(jnp.abs(out - ref_bf16)))

    # full-f32 reference: semantics check with bf16-appropriate tolerance
    ref_f32 = reference_forward(x, seq, params, ATOM_DIM, cast_bf16=False)
    assert jnp.allclose(out, ref_f32, atol=5e-2, rtol=5e-2), \
        float(jnp.max(jnp.abs(out - ref_f32)))

    print("KERNEL_OK")
</pallas_src>

<mosaic_0001>
module attributes {stable_mosaic.version = 11 : i64} {
  func.func @lin_amino_to_atom_kernel(%arg0: i32, %arg1: memref<8xi32, #tpu.memory_space<smem>>, %arg2: memref<1x8x128xbf16, #tpu.memory_space<vmem>>, %arg3: memref<1x128x128xbf16, #tpu.memory_space<vmem>>, %arg4: memref<1x8x128xf32, #tpu.memory_space<vmem>>) attributes {dimension_semantics = [#tpu.dimension_semantics<parallel>], iteration_bounds = array<i64: 8>, scalar_prefetch = 1 : i64, scratch_operands = 0 : i64, tpu.core_type = #tpu.core_type<tc>, window_params = [{transform_indices = @transform_0, window_bounds = array<i64: 1, 8, 128>}, {transform_indices = @transform_1, window_bounds = array<i64: 1, 128, 128>}, {transform_indices = @transform_2, window_bounds = array<i64: 1, 8, 128>}]} {
    %c0 = arith.constant 0 : index
    %c0_0 = arith.constant 0 : index
    %c0_1 = arith.constant 0 : index
    %0 = vector.load %arg2[%c0, %c0_0, %c0_1] : memref<1x8x128xbf16, #tpu.memory_space<vmem>>, vector<1x8x128xbf16>
    %1 = vector.shape_cast %0 : vector<1x8x128xbf16> to vector<8x128xbf16>
    %c0_2 = arith.constant 0 : index
    %c0_3 = arith.constant 0 : index
    %c0_4 = arith.constant 0 : index
    %2 = vector.load %arg3[%c0_2, %c0_3, %c0_4] : memref<1x128x128xbf16, #tpu.memory_space<vmem>>, vector<1x128x128xbf16>
    %3 = vector.shape_cast %2 : vector<1x128x128xbf16> to vector<128x128xbf16>
    %cst = arith.constant dense<0.000000e+00> : vector<8x128xf32>
    %4 = tpu.matmul %1, %3, %cst {dimension_numbers = #tpu.dot_dimension_numbers<[1], [0], [0], [1], [0, 0, 1, 1], [], []>} : vector<8x128xbf16>, vector<128x128xbf16>, vector<8x128xf32> -> vector<8x128xf32>
    %c0_5 = arith.constant 0 : index
    %c0_6 = arith.constant 0 : index
    %c0_7 = arith.constant 0 : index
    %5 = vector.load %arg4[%c0_5, %c0_6, %c0_7] : memref<1x8x128xf32, #tpu.memory_space<vmem>>, vector<1x8x128xf32>
    %6 = vector.shape_cast %5 : vector<1x8x128xf32> to vector<8x128xf32>
    %7 = vector.shape_cast %4 : vector<8x128xf32> to vector<1x8x128xf32>
    tpu.vector_store %arg4[%c0_5, %c0_6, %c0_7], %7 {strides = array<i32>} : memref<1x8x128xf32, #tpu.memory_space<vmem>>, vector<1x8x128xf32>,
    return
  }
  func.func @transform_0(%arg0: i32, %arg1: memref<8xi32, #tpu.memory_space<smem>>) -> (i32, i32, i32) {
    %c0_i32 = arith.constant 0 : i32
    %c0_i32_0 = arith.constant 0 : i32
    %c0_i32_1 = arith.constant 0 : i32
    return %arg0, %c0_i32, %c0_i32_0 : i32, i32, i32
  }
  func.func @transform_1(%arg0: i32, %arg1: memref<8xi32, #tpu.memory_space<smem>>) -> (i32, i32, i32) {
    %0 = arith.index_cast %arg0 : i32 to index
    %1 = memref.load %arg1[%0] : memref<8xi32, #tpu.memory_space<smem>>
    %c0_i32 = arith.constant 0 : i32
    %c0_i32_0 = arith.constant 0 : i32
    %c0_i32_1 = arith.constant 0 : i32
    return %1, %c0_i32, %c0_i32_0 : i32, i32, i32
  }
  func.func @transform_2(%arg0: i32, %arg1: memref<8xi32, #tpu.memory_space<smem>>) -> (i32, i32, i32) {
    %c0_i32 = arith.constant 0 : i32
    %c0_i32_0 = arith.constant 0 : i32
    %c0_i32_1 = arith.constant 0 : i32
    return %arg0, %c0_i32, %c0_i32_0 : i32, i32, i32
  }
}

</mosaic_0001>

<bundles_post_ra>
// kernel: squeeze.13
= control target key start
LH: loop header
LB: loop body
LE: loop exit
PB: predicated region body
PF: predicated region fallthrough
CT: control target
= control target key end

     0   :  { %s77_s10 = smov 124   ;;  %s78_s11 = smov 116   ;;  %vm3_vm0 = vcmask 31744   ;;  %s120_s0 = inlined_call_operand.vmem [shape: f32[1,6,16], index: 0, kind: input, shape index: {}]   ;;  %s121_s1 = inlined_call_operand.vmem [shape: f32[2,3,4,4], index: 1, kind: output, shape index: {}]  }
   0x1   :  { %v6_v0 = vld [vmem:[%s120_s0] sm:$0x3f]  }
   0x2   :  { %v22_v1 = vld [vmem:[%s120_s0] sm:$0x3f]   ;;  %7 = vrot.lane.b32.xlu0 %v6_v0, %s77_s10 }
   0x3   :  { %23 = vrot.lane.b32.xlu1 %v22_v1, %s78_s11  ;;  %v2_v2 = vld [vmem:[%s120_s0] sm:$0x3f]  }
   0x4   :  { %v14_v3 = vld [vmem:[%s120_s0] sm:$0x3f]   ;;  %5 = vst.msk [vmem:[#allocation0] ss:$8 sm:$0x30] %vm3_vm0, %v2_v2   ;;  %s79_s0 = smov 120  }
   0x5   :  { %4 = vst.msk [vmem:[#allocation0] ss:$8 sm:$0xf] %vm3_vm0, %v2_v2  }
   0x6   :  { %15 = vrot.lane.b32.xlu0 %v14_v3, %s79_s0 }
  0x74   :  { %v8_v4 = vpop.permute.xlu0 %7  }
  0x75   :  { %v24_v5 = vpop.permute.xlu1 %23   ;;  %11 = vst.msk [vmem:[#allocation0 + $0x1] ss:$8 sm:$0xf] %vm3_vm0, %v8_v4   ;;  %13 = vst.msk [vmem:[#allocation0 + $0x1] ss:$8 sm:$0x30] %vm3_vm0, %v8_v4  }
  0x76   :  { %27 = vst.msk [vmem:[#allocation0 + $0x3] ss:$8 sm:$0xf] %vm3_vm0, %v24_v5   ;;  %29 = vst.msk [vmem:[#allocation0 + $0x3] ss:$8 sm:$0x30] %vm3_vm0, %v24_v5  }
  0x78   :  { %v16_v6 = vpop.permute.xlu0 %15  }
  0x79   :  { %19 = vst.msk [vmem:[#allocation0 + $0x2] ss:$8 sm:$0xf] %vm3_vm0, %v16_v6   ;;  %21 = vst.msk [vmem:[#allocation0 + $0x2] ss:$8 sm:$0x30] %vm3_vm0, %v16_v6  }
  0x80   :  { %v33_v7 = vld [vmem:[#allocation0] sm:$0xf]  ;;  %v37_v8 = vld [vmem:[#allocation0 + $0x8] sm:$0xf]  ;;  %v42_v9 = vld [vmem:[#allocation0 + $0x10] sm:$0xf] }
  0x81   :  { %35 = vst [vmem:[%s121_s1] sm:$0xf] %v33_v7  ;;  %69 = vst [vmem:[%s121_s1 + $0x4] sm:$0xf] %v37_v8  ;;  %v48_v10 = vld [vmem:[#allocation0 + $0x18] sm:$0xf] }
  0x82   :  { %70 = vst [vmem:[%s121_s1 + $0x8] sm:$0xf] %v42_v9  ;;  %v54_v11 = vld [vmem:[#allocation0 + $0x20] sm:$0xf]  ;;  %v60_v12 = vld [vmem:[#allocation0 + $0x28] sm:$0xf] }
  0x83   :  { %71 = vst [vmem:[%s121_s1 + $0xc] sm:$0xf] %v48_v10  ;;  %72 = vst [vmem:[%s121_s1 + $0x10] sm:$0xf] %v54_v11 }
  0x84   :  { %73 = vst [vmem:[%s121_s1 + $0x14] sm:$0xf] %v60_v12 }

// kernel: squeeze.14
= control target key start
LH: loop header
LB: loop body
LE: loop exit
PB: predicated region body
PF: predicated region fallthrough
CT: control target
= control target key end

     0   :  { %vm3_vm0 = vcmask 31744   ;;  %s83_s12 = smov 124   ;;  %s84_s13 = smov 116   ;;  %s188_s0 = inlined_call_operand.vmem [shape: f32[1,6,32], index: 0, kind: input, shape index: {}]   ;;  %s189_s1 = inlined_call_operand.vmem [shape: f32[2,3,8,4], index: 1, kind: output, shape index: {}]  }
   0x1   :  { %v6_v0 = vld [vmem:[%s188_s0] sm:$0x3f]   ;;  %s85_s22 = smov 120   ;;  %s86_s23 = smov 112  }
   0x2   :  { %v22_v1 = vld [vmem:[%s188_s0] sm:$0x3f]   ;;  %7 = vrot.lane.b32.xlu0 %v6_v0, %s83_s12  ;;  %s87_s28 = smov 108   ;;  %s88_s29 = smov 104  }
   0x3   :  { %v2_v2 = vld [vmem:[%s188_s0] sm:$0x3f]   ;;  %23 = vrot.lane.b32.xlu1 %v22_v1, %s84_s13 }
   0x4   :  { %4 = vst.msk [vmem:[%s189_s1] ss:$8 sm:$0xf] %vm3_vm0, %v2_v2   ;;  %5 = vst.msk [vmem:[%s189_s1] ss:$8 sm:$0x30] %vm3_vm0, %v2_v2  }
   0x5   :  { %v14_v3 = vld [vmem:[%s188_s0] sm:$0x3f]  }
   0x6   :  { %v30_v4 = vld [vmem:[%s188_s0] sm:$0x3f]   ;;  %15 = vrot.lane.b32.xlu0 %v14_v3, %s85_s22 }
   0x7   :  { %31 = vrot.lane.b32.xlu1 %v30_v4, %s86_s23  ;;  %v38_v5 = vld [vmem:[%s188_s0] sm:$0x3f]  }
   0x8   :  { %v46_v6 = vld [vmem:[%s188_s0] sm:$0x3f]  }
   0x9   :  { %v54_v7 = vld [vmem:[%s188_s0] sm:$0x3f]   ;;  %s89_s0 = smov 100  }
   0xa   :  { %39 = vrot.lane.b32.xlu0 %v38_v5, %s87_s28 }
   0xb   :  { %47 = vrot.lane.b32.xlu1 %v46_v6, %s88_s29 }
   0xe   :  { %55 = vrot.lane.b32.xlu0 %v54_v7, %s89_s0 }
  0x74   :  { %v8_v8 = vpop.permute.xlu0 %7  }
  0x75   :  { %v24_v9 = vpop.permute.xlu1 %23   ;;  %62 = vst.msk [vmem:[%s189_s1 + $0x1] ss:$8 sm:$0xf] %vm3_vm0, %v8_v8   ;;  %63 = vst.msk [vmem:[%s189_s1 + $0x1] ss:$8 sm:$0x30] %vm3_vm0, %v8_v8  }
  0x76   :  { %66 = vst.msk [vmem:[%s189_s1 + $0x3] ss:$8 sm:$0xf] %vm3_vm0, %v24_v9   ;;  %67 = vst.msk [vmem:[%s189_s1 + $0x3] ss:$8 sm:$0x30] %vm3_vm0, %v24_v9  }
  0x78   :  { %v16_v10 = vpop.permute.xlu0 %15  }
  0x79   :  { %v32_v11 = vpop.permute.xlu1 %31   ;;  %64 = vst.msk [vmem:[%s189_s1 + $0x2] ss:$8 sm:$0xf] %vm3_vm0, %v16_v10   ;;  %65 = vst.msk [vmem:[%s189_s1 + $0x2] ss:$8 sm:$0x30] %vm3_vm0, %v16_v10  }
  0x7a   :  { %68 = vst.msk [vmem:[%s189_s1 + $0x4] ss:$8 sm:$0xf] %vm3_vm0, %v32_v11   ;;  %69 = vst.msk [vmem:[%s189_s1 + $0x4] ss:$8 sm:$0x30] %vm3_vm0, %v32_v11  }
  0x7c   :  { %v40_v12 = vpop.permute.xlu0 %39  }
  0x7d   :  { %v48_v13 = vpop.permute.xlu1 %47   ;;  %70 = vst.msk [vmem:[%s189_s1 + $0x5] ss:$8 sm:$0xf] %vm3_vm0, %v40_v12   ;;  %71 = vst.msk [vmem:[%s189_s1 + $0x5] ss:$8 sm:$0x30] %vm3_vm0, %v40_v12  }
  0x7e   :  { %72 = vst.msk [vmem:[%s189_s1 + $0x6] ss:$8 sm:$0xf] %vm3_vm0, %v48_v13   ;;  %73 = vst.msk [vmem:[%s189_s1 + $0x6] ss:$8 sm:$0x30] %vm3_vm0, %v48_v13  }
  0x80   :  { %v56_v14 = vpop.permute.xlu0 %55  }
  0x81   :  { %74 = vst.msk [vmem:[%s189_s1 + $0x7] ss:$8 sm:$0xf] %vm3_vm0, %v56_v14   ;;  %75 = vst.msk [vmem:[%s189_s1 + $0x7] ss:$8 sm:$0x30] %vm3_vm0, %v56_v14  }

// kernel: squeeze.15
= control target key start
LH: loop header
LB: loop body
LE: loop exit
PB: predicated region body
PF: predicated region fallthrough
CT: control target
= control target key end

     0   :  { %vm3_vm0 = vcmask 31744   ;;  %s50_s12 = smov 116   ;;  %s51_s13 = smov 124   ;;  %s119_s0 = inlined_call_operand.vmem [shape: f32[1,6,20], index: 0, kind: input, shape index: {}]   ;;  %s120_s1 = inlined_call_operand.vmem [shape: f32[2,3,5,4], index: 1, kind: output, shape index: {}]  }
   0x1   :  { %v22_v0 = vld [vmem:[%s119_s0] sm:$0x3f]   ;;  %s53_s22 = smov 120  }
   0x2   :  { %v6_v1 = vld [vmem:[%s119_s0] sm:$0x3f]   ;;  %23 = vrot.lane.b32.xlu1 %v22_v0, %s50_s12 }
   0x3   :  { %v2_v2 = vld [vmem:[%s119_s0] sm:$0x3f]   ;;  %7 = vrot.lane.b32.xlu0 %v6_v1, %s51_s13 }
   0x4   :  { %4 = vst.msk [vmem:[%s120_s1] ss:$8 sm:$0xf] %vm3_vm0, %v2_v2   ;;  %5 = vst.msk [vmem:[%s120_s1] ss:$8 sm:$0x30] %vm3_vm0, %v2_v2  }
   0x5   :  { %v30_v3 = vld [vmem:[%s119_s0] sm:$0x3f]  }
   0x6   :  { %v14_v4 = vld [vmem:[%s119_s0] sm:$0x3f]   ;;  %s52_s0 = smov 112  }
   0x7   :  { %31 = vrot.lane.b32.xlu1 %v30_v3, %s52_s0  ;;  %15 = vrot.lane.b32.xlu0 %v14_v4, %s53_s22 }
  0x74   :  { %v24_v5 = vpop.permute.xlu1 %23  }
  0x75   :  { %v8_v6 = vpop.permute.xlu0 %7   ;;  %42 = vst.msk [vmem:[%s120_s1 + $0x3] ss:$8 sm:$0xf] %vm3_vm0, %v24_v5   ;;  %43 = vst.msk [vmem:[%s120_s1 + $0x3] ss:$8 sm:$0x30] %vm3_vm0, %v24_v5  }
  0x76   :  { %38 = vst.msk [vmem:[%s120_s1 + $0x1] ss:$8 sm:$0xf] %vm3_vm0, %v8_v6   ;;  %39 = vst.msk [vmem:[%s120_s1 + $0x1] ss:$8 sm:$0x30] %vm3_vm0, %v8_v6  }
  0x79   :  { %v32_v7 = vpop.permute.xlu1 %31   ;;  %v16_v8 = vpop.permute.xlu0 %15  }
  0x7a   :  { %44 = vst.msk [vmem:[%s120_s1 + $0x4] ss:$8 sm:$0xf] %vm3_vm0, %v32_v7   ;;  %45 = vst.msk [vmem:[%s120_s1 + $0x4] ss:$8 sm:$0x30] %vm3_vm0, %v32_v7  }
  0x7b   :  { %40 = vst.msk [vmem:[%s120_s1 + $0x2] ss:$8 sm:$0xf] %vm3_vm0, %v16_v8   ;;  %41 = vst.msk [vmem:[%s120_s1 + $0x2] ss:$8 sm:$0x30] %vm3_vm0, %v16_v8  }

// kernel: squeeze.10
= control target key start
LH: loop header
LB: loop body
LE: loop exit
PB: predicated region body
PF: predicated region fallthrough
CT: control target
= control target key end

     0   :  { %vm3_vm0 = vcmask 31744   ;;  %s72_s12 = smov 116   ;;  %s73_s13 = smov 124   ;;  %s165_s0 = inlined_call_operand.vmem [shape: f32[1,6,28], index: 0, kind: input, shape index: {}]   ;;  %s166_s1 = inlined_call_operand.vmem [shape: f32[2,3,7,4], index: 1, kind: output, shape index: {}]  }
   0x1   :  { %v22_v0 = vld [vmem:[%s165_s0] sm:$0x3f]   ;;  %s74_s22 = smov 112   ;;  %s75_s23 = smov 120  }
   0x2   :  { %v6_v1 = vld [vmem:[%s165_s0] sm:$0x3f]   ;;  %23 = vrot.lane.b32.xlu1 %v22_v0, %s72_s12  ;;  %s77_s28 = smov 108  }
   0x3   :  { %v2_v2 = vld [vmem:[%s165_s0] sm:$0x3f]   ;;  %7 = vrot.lane.b32.xlu0 %v6_v1, %s73_s13 }
   0x4   :  { %4 = vst.msk [vmem:[%s166_s1] ss:$8 sm:$0xf] %vm3_vm0, %v2_v2   ;;  %5 = vst.msk [vmem:[%s166_s1] ss:$8 sm:$0x30] %vm3_vm0, %v2_v2  }
   0x5   :  { %v30_v3 = vld [vmem:[%s165_s0] sm:$0x3f]  }
   0x6   :  { %v14_v4 = vld [vmem:[%s165_s0] sm:$0x3f]   ;;  %31 = vrot.lane.b32.xlu1 %v30_v3, %s74_s22 }
   0x7   :  { %15 = vrot.lane.b32.xlu0 %v14_v4, %s75_s23  ;;  %v46_v5 = vld [vmem:[%s165_s0] sm:$0x3f]  }
   0x8   :  { %v38_v6 = vld [vmem:[%s165_s0] sm:$0x3f]   ;;  %s76_s0 = smov 104  }
   0xa   :  { %47 = vrot.lane.b32.xlu1 %v46_v5, %s76_s0 }
   0xb   :  { %39 = vrot.lane.b32.xlu0 %v38_v6, %s77_s28 }
  0x74   :  { %v24_v7 = vpop.permute.xlu1 %23  }
  0x75   :  { %v8_v8 = vpop.permute.xlu0 %7   ;;  %58 = vst.msk [vmem:[%s166_s1 + $0x3] ss:$8 sm:$0xf] %vm3_vm0, %v24_v7   ;;  %59 = vst.msk [vmem:[%s166_s1 + $0x3] ss:$8 sm:$0x30] %vm3_vm0, %v24_v7  }
  0x76   :  { %54 = vst.msk [vmem:[%s166_s1 + $0x1] ss:$8 sm:$0xf] %vm3_vm0, %v8_v8   ;;  %55 = vst.msk [vmem:[%s166_s1 + $0x1] ss:$8 sm:$0x30] %vm3_vm0, %v8_v8  }
  0x78   :  { %v32_v9 = vpop.permute.xlu1 %31  }
  0x79   :  { %v16_v10 = vpop.permute.xlu0 %15   ;;  %60 = vst.msk [vmem:[%s166_s1 + $0x4] ss:$8 sm:$0xf] %vm3_vm0, %v32_v9   ;;  %61 = vst.msk [vmem:[%s166_s1 + $0x4] ss:$8 sm:$0x30] %vm3_vm0, %v32_v9  }
  0x7a   :  { %56 = vst.msk [vmem:[%s166_s1 + $0x2] ss:$8 sm:$0xf] %vm3_vm0, %v16_v10   ;;  %57 = vst.msk [vmem:[%s166_s1 + $0x2] ss:$8 sm:$0x30] %vm3_vm0, %v16_v10  }
  0x7c   :  { %v48_v11 = vpop.permute.xlu1 %47  }
  0x7d   :  { %v40_v12 = vpop.permute.xlu0 %39   ;;  %64 = vst.msk [vmem:[%s166_s1 + $0x6] ss:$8 sm:$0xf] %vm3_vm0, %v48_v11   ;;  %65 = vst.msk [vmem:[%s166_s1 + $0x6] ss:$8 sm:$0x30] %vm3_vm0, %v48_v11  }
  0x7e   :  { %62 = vst.msk [vmem:[%s166_s1 + $0x5] ss:$8 sm:$0xf] %vm3_vm0, %v40_v12   ;;  %63 = vst.msk [vmem:[%s166_s1 + $0x5] ss:$8 sm:$0x30] %vm3_vm0, %v40_v12  }

// kernel: lin_amino_to_atom.1
= control target key start
LH: loop header
LB: loop body
LE: loop exit
PB: predicated region body
PF: predicated region fallthrough
CT: control target
= control target key end

     0   :  { %s694_s0 = inlined_call_operand.vmem [shape: s32[8], index: 0, kind: input, shape index: {}]   ;;  %s695_s1 = inlined_call_operand.vmem [shape: bf16[8,8,128], index: 1, kind: input, shape index: {}]   ;;  %s696_s2 = inlined_call_operand.hbm [shape: bf16[4,128,128], index: 2, kind: input, shape index: {}]   ;;  %s697_s3 = inlined_call_operand.vmem [shape: f32[8,8,128], index: 3, kind: output, shape index: {}]  }
   0x1   :  { %s8_s14 = sshll.u32 %s694_s0, 4  ;;  %s9_s14 = int_to_ptr.vmem [resolvable:$true] %s8_s14 }
   0x2   :  { %s480_s15 = scalar_lea.vmem %s9_s14, 16  ;;  %p485_p1 = scmp.lt.s32.totalorder %s9_s14, %s9_s14 }
   0x3   :  { %p481_p0 = scmp.ne.s32.totalorder %s9_s14, %s480_s15  ;;  %p486_p2 = scmp.lt.s32.totalorder %s480_s15, %s480_s15 }
   0x5   :  { %p487_p3 = por %p486_p2, %p485_p1 }
   0x7   :  { %p488_p4 = pnand %p487_p3, %p481_p0 }
   0x9   :  { %491 = shalt.err (!%p488_p4)  }
   0xa   :  { %s560_s16 = smov [#allocation3]  }
   0xb   :  { %11 = dma.vmem_to_smem %s9_s14, 16, %s560_s16, [#allocation2] }
   0xc   :  { %538 = dma.done.wait [#allocation2], 16 }
   0xd   :  { %539 = vsyncadd [#allocation2], 4294967280 }
   0xe   :  { %13 = sfence }
   0xf   :  { %14 = vsyncpa [#allocation5], 0 }
  0x10   :  { %16 = vsyncpa [#allocation5 + $0x1], 0  ;;  %s589_s17 = smov 0   ;;  %s591_s18 = smov 0  }
  0x11   :  { %s593_s0 = smov 0   ;;  %s595_s19 = smov 0  }
  0x12 LB: > { %s605_s20 = sadd.s32 4294967295, %s558_s19   ;;  %s607_s21 = sadd.s32 1, %s558_s19   ;;  %s558_s19 = sphi %s595_s19, %s706_s19   ;;  %s554_s0 = sphi %s593_s0, %s705_s0   ;;  %s550_s18 = sphi %s591_s18, %s704_s18   ;;  %s546_s17 = sphi %s589_s17, %s703_s17  }
  0x13   : > { %s52_s22 = sld [smem:[#allocation3 + %s558_s19]]  ;;  %p64_p5 = scmp.ne.s32.totalorder %s554_s0, %s550_s18 }
  0x14   : > { %s53_s23 = sld [smem:[#allocation3 + %s607_s21]]  ;;  %p65_p6 = scmp.eq.s32.totalorder %s558_s19, 0 }
  0x15   : > { %p70_p7 = scmp.ne.s32.totalorder %s550_s18, %s546_s17  ;;  %p71_p8 = scmp.eq.s32.totalorder %s605_s20, 0 }
  0x16   : > { %s57_s24 = sadd.s32 1, %s554_s0  ;;  %p66_p9 = por %p65_p6, %p64_p5 }
  0x17   : > { %p615_p10 = por %p71_p8, %p70_p7  ;;  %s127_s26 = sand.u32 1, %s554_s0  }
  0x18   : > { %p434_p11 = scmp.lt.s32.totalorder %s558_s19, 8  ;;  %s377_s28 = sshll.u32 %s127_s26, 6 }
  0x19   : > { %s699_s25 = scalar_select %p615_p10, 1, 0 }
  0x1a   : > { %s54_s27 = ssub.s32 %s52_s22, %s53_s23  ;;  %p620_p13 = pnand %p434_p11, %p66_p9 }
  0x1b   : > { %p55_p12 = scmp.eq.s32.totalorder %s54_s27, 0  ;;  %s131_s7 = scalar_lea.vmem [#allocation4], %s377_s28 }
  0x1c   : > { %s424_s4 = scalar_select %p66_p9, [#allocation3], [#allocation6] }
  0x1d   : > { %s625_s30 = scalar_select %p55_p12, %s554_s0, %s57_s24  }
  0x1e   : > { %s425_s5 = scalar_select %p66_p9, %s558_s19, 0 }
  0x1f   : > { %s708_s4 = smov (!%p434_p11, %s424_s4), [#allocation7]  ;;  %s139_s8 = sshll.u32 %s131_s7, 4  ;;  %s627_s8 = int_to_ptr.vmem [resolvable:$true] %s139_s8 }
  0x20   : > { %s710_s5 = smov (!%p434_p11, %s425_s5), 0  ;;  %p380_p0 = scmp.ge.s32.totalorder %s558_s19, 1 }
  0x21   : > { %s132_s6 = sld [smem:[%s708_s4 + %s710_s5]]  ;;  %p147_p1 = scmp.lt.s32.totalorder %s558_s19, 9 }
  0x22   : > { %s638_s14 = scalar_lea.sflag [#allocation5], %s127_s26  ;;  %p494_p4 = pneg %p620_p13 }
  0x23   : > { %p629_p2 = pnand %p380_p0, %p147_p1  ;;  %s497_s19 = scalar_lea.hbm %s696_s2, 4096 }
  0x27   : > { %s394_s10 = sshll.u32 %s132_s6, 10 }
  0x28   : > { %s636_s13 = scalar_lea.hbm %s696_s2, %s394_s10 }
  0x29   : > { %s492_s15 = scalar_lea.hbm %s636_s13, 1024  ;;  %p498_p7 = scmp.lt.u32.totalorder %s636_s13, %s696_s2 }
  0x2a   : > { %p493_p3 = scmp.ne.s32.totalorder %s636_s13, %s492_s15  ;;  %p499_p8 = scmp.lt.u32.totalorder %s497_s19, %s492_s15 }
  0x2b   : > { %p501_p11 = scmp.lt.u32.totalorder %s492_s15, %s636_s13 }
  0x2c   : > { %p495_p5 = pnand %p494_p4, %p493_p3  ;;  %p500_p9 = por %p499_p8, %p498_p7 }
  0x2e   : > { %p496_p6 = pneg %p495_p5  ;;  %p502_p12 = por %p501_p11, %p500_p9 }
  0x30   : > { %p503_p0 = pnand %p502_p12, %p496_p6 }
  0x32   : > { %506 = shalt.err (!%p503_p0)
}
  0x33   : > { %s507_s24 = scalar_lea.vmem %s627_s8, 1024  ;;  %s561_s26 = smov [#allocation4]  }
  0x34   : > { %p508_p1 = scmp.ne.s32.totalorder %s627_s8, %s507_s24  ;;  %s512_s27 = sshll.u32 %s561_s26, 4  ;;  %s513_s27 = int_to_ptr.vmem [resolvable:$false] %s512_s27 }
  0x35   : > { %s514_s28 = scalar_lea.vmem %s513_s27, 2048  ;;  %p515_p10 = scmp.lt.s32.totalorder %s627_s8, %s513_s27 }
  0x36   : > { %p510_p3 = pnand %p508_p1, %p494_p4  ;;  %p516_p7 = scmp.lt.s32.totalorder %s514_s28, %s507_s24 }
  0x38   : > { %p511_p5 = pneg %p510_p3  ;;  %p517_p8 = por %p516_p7, %p515_p10 }
  0x3a   : > { %p518_p9 = pnand %p517_p8, %p511_p5 }
  0x3c   : > { %521 = shalt.err (!%p518_p9)
}
  0x3d   : > { %s562_s4 = smov 64   ;;  %s563_s5 = smov 4  }
  0x3e   : > { %433 = dma.hbm_to_vmem [thread:$0]  (!%p620_p13), %s636_s13, 1024, %s627_s8, %s638_s14, %s562_s4, %s562_s4, %s563_s5  }
  0x3f   : > { %151 = sbr.rel (%p629_p2) target bundleno = 319 (0x13f), region = 28  ;;  %s153_s6 = sand.u32 (!%p629_p2), 1, %s550_s18  }
  0x40   : > { %s381_s7 = sshll.u32 (!%p629_p2), %s153_s6, 6  ;;  %s154_s10 = scalar_lea.sflag (!%p629_p2), [#allocation5], %s153_s6 }
  0x41   : > { %s157_s11 = scalar_lea.vmem (!%p629_p2), [#allocation4], %s381_s7  ;;  %p702_p10 = scmp.ne.s32.totalorder (!%p629_p2), %s699_s25, 0 }
  0x46   : > { %541 = dma.done.wait (%p702_p10), %s154_s10, 1024  }
  0x47   : > { %543 = vsyncadd (%p702_p10), %s154_s10, 4294966272  ;;  %v564_v0 = vmov 0.0   ;;  %vm565_vm0 = vmmov 0   ;;  %v472_v1 = vld [vmem:[%s157_s11] sm:$0xff]   ;;  %v473_v2 = vld [vmem:[%s157_s11 + $0x8] sm:$0xff]   ;;  %p181_p13 = scmp.lt.s32.totalorder %s605_s20, 7 }
  0x48   : > { %404 = vmatprep.subr.bf16.mxu0 %v564_v0  ;;  %420 = vmatprep.mubr.msk.bf16.mxu0 %vm565_vm0, %v564_v0  ;;  %v474_v3 = vld [vmem:[%s157_s11 + $0x10] sm:$0xff]   ;;  %v475_v4 = vld [vmem:[%s157_s11 + $0x18] sm:$0xff]   ;;  %v476_v5 = vld [vmem:[%s157_s11 + $0x20] sm:$0xff]  }
  0x49   : > { %405 = vmatpush3.bf16.msra.mxu0 %v472_v1  ;;  %v477_v6 = vld [vmem:[%s157_s11 + $0x28] sm:$0xff]   ;;  %s712_s20 = smov (!%p181_p13, %s605_s20), 7  ;;  %v478_v7 = vld [vmem:[%s157_s11 + $0x30] sm:$0xff]   ;;  %v479_v8 = vld [vmem:[%s157_s11 + $0x38] sm:$0xff]  }
  0x4a   : > { %406 = vmatprep.subr.bf16.mxu0 %v564_v0  ;;  %s382_s25 = sshll.u32 %s712_s20, 2  ;;  %s383_s12 = sshll.u32 %s712_s20, 3 }
  0x4b   : > { %s184_s9 = scalar_lea.vmem %s695_s1, %s382_s25  ;;  %s189_s15 = scalar_lea.vmem %s697_s3, %s383_s12 }
  0x4c   : > { %v191_v9 = vld [vmem:[%s184_s9] sm:$0xf] }
  0x4d   : > { %407 = vmatpush3.bf16.msra.mxu0 %v473_v2 }
  0x4e   : > { %408 = vmatprep.subr.bf16.mxu0 %v564_v0 }
  0x51   : > { %409 = vmatpush3.bf16.msra.mxu0 %v474_v3 }
  0x52   : > { %410 = vmatprep.subr.bf16.mxu0 %v564_v0 }
  0x55   : > { %411 = vmatpush3.bf16.msra.mxu0 %v475_v4 }
  0x56   : > { %412 = vmatprep.subr.bf16.mxu0 %v564_v0 }
  0x59   : > { %413 = vmatpush3.bf16.msra.mxu0 %v476_v5 }
  0x5a   : > { %414 = vmatprep.subr.bf16.mxu0 %v564_v0 }
  0x5d   : > { %415 = vmatpush3.bf16.msra.mxu0 %v477_v6 }
  0x5e   : > { %416 = vmatprep.subr.bf16.mxu0 %v564_v0 }
  0x61   : > { %417 = vmatpush3.bf16.msra.mxu0 %v478_v7 }
  0x62   : > { %418 = vmatprep.subr.bf16.mxu0 %v564_v0 }
  0x65   : > { %419 = vmatpush3.bf16.msra.mxu0 %v479_v8 }
  0x68   : > { %421 = vmatmul.mubr.bf16.vlgmr.msra.gmra.mrb[0].mxu0 %v191_v9 }
 0x13b   : > { %v290_v10 = vpop.f32.mrb[0].mxu0 }
 0x13c   : > { %296 = vst [vmem:[%s189_s15] sm:$0xff] %v290_v10  ;;  %v422_v11 = vpop.f32.mrb[1].mxu0 }
 0x13d   : > { %v293_v12 = vpop.f32.mrb[2].mxu0 }
 0x13e   : > { %v423_v13 = vpop.f32.mrb[3].mxu0 }
 0x13f PF: > { %p19_p2 = scmp.ge.s32.totalorder %s607_s21, 10   ;;  %s703_s17 = smov %s550_s18 }
 0x140   : > { %s704_s18 = smov %s554_s0  ;;  %s705_s0 = smov %s625_s30 }
 0x141   : > { %s706_s19 = smov %s607_s21  ;;  %21 = sbr.rel (!%p19_p2) target bundleno = 18 (0x12), region = 71 }
 0x148   :  { %316 = vsyncpa [#allocation5], 1 }
 0x149   :  { %318 = vsyncpa [#allocation5 + $0x1], 1 }

</bundles_post_ra>
